<compile_context>
chip_gen: v7x
topology: tpu7x:2x2x1
jax: 0.10.0
libtpu: 0.0.40
codegen_flags: <defaults>
</compile_context>

<pallas_src>
import functools

import jax
import jax.numpy as jnp
from jax.experimental import pallas as pl
from jax.experimental.pallas import tpu as pltpu


def _round_up(x, m):
    return ((x + m - 1) // m) * m


# ----------------------------- Pallas kernels ------------------------------


def _noisy_linear_train_kernel(x_ref, wmu_ref, wsig_ref, ein_ref, eout_ref,
                               b_ref, o_ref, acc_ref):
    """One (tm, tn) output tile, reducing over the K grid axis (axis 2).

    Weights arrive pre-transposed as (K, N) tiles; the rank-1 NoisyNet
    epsilon is reconstructed on the fly from its factors (VPU work) instead
    of streaming a third full weight matrix from HBM.
    """
    k = pl.program_id(2)

    @pl.when(k == 0)
    def _():
        acc_ref[...] = jnp.zeros_like(acc_ref)

    w = wmu_ref[...] + wsig_ref[...] * (ein_ref[...] * eout_ref[...])
    acc_ref[...] += jnp.dot(x_ref[...], w, preferred_element_type=jnp.float32)

    @pl.when(k == pl.num_programs(2) - 1)
    def _():
        o_ref[...] = (acc_ref[...] + b_ref[...]).astype(o_ref.dtype)


def _noisy_linear_eval_kernel(x_ref, wmu_ref, b_ref, o_ref, acc_ref):
    k = pl.program_id(2)

    @pl.when(k == 0)
    def _():
        acc_ref[...] = jnp.zeros_like(acc_ref)

    acc_ref[...] += jnp.dot(x_ref[...], wmu_ref[...],
                            preferred_element_type=jnp.float32)

    @pl.when(k == pl.num_programs(2) - 1)
    def _():
        o_ref[...] = (acc_ref[...] + b_ref[...]).astype(o_ref.dtype)


# ------------------------------ JAX wrapper --------------------------------

# Tile caps sized for v7x's 64 MiB VMEM (32 MiB default scoped budget):
# worst case ~ x(128,512)*2 + 2 weight tiles (512,512)*2 + out(128,512)*2
# + acc(128,512) ≈ 5.5 MiB of VMEM -> comfortably pipelined on v5e/v6e/v7x.
_TM_MAX = 128
_TN_MAX = 512
_TK_MAX = 512


@functools.partial(jax.jit, static_argnames=("training",))
def noisy_layer_forward(x, params, training=True):
    """Pallas implementation of NoisyLayer.forward.

    x:      (B, in_features) float32
    params: dict with weight_mu/weight_sigma (out, in), bias_mu/bias_sigma
            (out,), and the factorized noise eps_in (in,), eps_out (out,)
            (bias_epsilon == eps_out, as in the torch module).
    """
    B, in_f = x.shape
    out_f = params["weight_mu"].shape[0]

    # Tile sizes (multiples of 8 / 128), clamped to the padded problem size.
    tm = min(_TM_MAX, _round_up(B, 8))
    tn = min(_TN_MAX, _round_up(out_f, 128))
    tk = min(_TK_MAX, _round_up(in_f, 128))
    Bp = _round_up(B, tm)
    Np = _round_up(out_f, tn)
    Kp = _round_up(in_f, tk)

    f32 = jnp.float32

    # Pad + pre-transpose once, outside the kernel hot loop. Zero padding is
    # exact: padded K rows contribute nothing, padded N cols are sliced off.
    xp = jnp.zeros((Bp, Kp), x.dtype).at[:B, :in_f].set(x)
    wmu_t = jnp.zeros((Kp, Np), f32).at[:in_f, :out_f].set(
        params["weight_mu"].T)

    grid = (Bp // tm, Np // tn, Kp // tk)
    out_shape = jax.ShapeDtypeStruct((Bp, Np), x.dtype)

    x_spec = pl.BlockSpec((tm, tk), lambda i, j, k: (i, k))
    w_spec = pl.BlockSpec((tk, tn), lambda i, j, k: (k, j))
    col_spec = pl.BlockSpec((tk, 1), lambda i, j, k: (k, 0))
    row_spec = pl.BlockSpec((1, tn), lambda i, j, k: (0, j))
    o_spec = pl.BlockSpec((tm, tn), lambda i, j, k: (i, j))
    scratch = [pltpu.VMEM((tm, tn), jnp.float32)]
    cparams = pltpu.CompilerParams(
        dimension_semantics=("parallel", "parallel", "arbitrary"))

    if training:
        wsig_t = jnp.zeros((Kp, Np), f32).at[:in_f, :out_f].set(
            params["weight_sigma"].T)
        ein = jnp.zeros((Kp, 1), f32).at[:in_f, 0].set(params["eps_in"])
        eout = jnp.zeros((1, Np), f32).at[0, :out_f].set(params["eps_out"])
        bias = (params["bias_mu"]
                + params["bias_sigma"] * params["bias_epsilon"])
        bias_p = jnp.zeros((1, Np), f32).at[0, :out_f].set(bias)

        cost = pl.CostEstimate(
            flops=2 * Bp * Kp * Np,
            transcendentals=0,
            bytes_accessed=4 * (Bp * Kp + 2 * Kp * Np + Kp + 2 * Np
                                + Bp * Np),
        )
        out_p = pl.pallas_call(
            _noisy_linear_train_kernel,
            out_shape=out_shape,
            grid_spec=pltpu.PrefetchScalarGridSpec(
                num_scalar_prefetch=0,
                grid=grid,
                in_specs=[x_spec, w_spec, w_spec, col_spec, row_spec,
                          row_spec],
                out_specs=o_spec,
                scratch_shapes=scratch),
            compiler_params=cparams,
            cost_estimate=cost,
        )(xp, wmu_t, wsig_t, ein, eout, bias_p)
    else:
        bias_p = jnp.zeros((1, Np), f32).at[0, :out_f].set(params["bias_mu"])
        cost = pl.CostEstimate(
            flops=2 * Bp * Kp * Np,
            transcendentals=0,
            bytes_accessed=4 * (Bp * Kp + Kp * Np + Np + Bp * Np),
        )
        out_p = pl.pallas_call(
            _noisy_linear_eval_kernel,
            out_shape=out_shape,
            grid_spec=pltpu.PrefetchScalarGridSpec(
                num_scalar_prefetch=0,
                grid=grid,
                in_specs=[x_spec, w_spec, row_spec],
                out_specs=o_spec,
                scratch_shapes=scratch),
            compiler_params=cparams,
            cost_estimate=cost,
        )(xp, wmu_t, bias_p)

    return out_p[:B, :out_f]


# ----------------------- Deterministic parameter init ----------------------


def _scale_noise(key, size):
    # f(x) = sign(x) * sqrt(|x|), factorized-Gaussian noise.
    x = jax.random.normal(key, (size,), dtype=jnp.float32)
    return jnp.sign(x) * jnp.sqrt(jnp.abs(x))


def init_noisy_layer(key, in_features, out_features, sigma_init=0.017):
    k_wmu, k_bmu, k_ein, k_eout = jax.random.split(key, 4)
    mu_range = 1.0 / jnp.sqrt(jnp.float32(in_features))

    weight_mu = jax.random.uniform(
        k_wmu, (out_features, in_features), jnp.float32, -mu_range, mu_range)
    weight_sigma = jnp.full((out_features, in_features),
                            sigma_init / float(in_features) ** 0.5,
                            jnp.float32)
    bias_mu = jax.random.uniform(
        k_bmu, (out_features,), jnp.float32, -mu_range, mu_range)
    bias_sigma = jnp.full((out_features,),
                          sigma_init / float(out_features) ** 0.5,
                          jnp.float32)

    # Factorized noise is kept as its rank-1 factors; the kernel never reads
    # a materialized (out, in) weight_epsilon (saves 1/3 of the HBM traffic).
    eps_in = _scale_noise(k_ein, in_features)
    eps_out = _scale_noise(k_eout, out_features)

    return {
        "weight_mu": weight_mu,
        "weight_sigma": weight_sigma,
        "bias_mu": bias_mu,
        "bias_sigma": bias_sigma,
        "eps_in": eps_in,
        "eps_out": eps_out,
        "bias_epsilon": eps_out,   # same buffer as in the torch module
    }


# ---------------------------------- main ------------------------------------


if __name__ == "__main__":
    key = jax.random.PRNGKey(0)
    k_param, k_x = jax.random.split(key)

    B, IN_F, OUT_F = 8, 32, 64
    params = init_noisy_layer(k_param, IN_F, OUT_F, sigma_init=0.017)
    x = jax.random.normal(k_x, (B, IN_F), dtype=jnp.float32)

    # Training-mode forward (noisy weights) + eval-mode forward.
    y_train = noisy_layer_forward(x, params, training=True)
    y_eval = noisy_layer_forward(x, params, training=False)
    jax.block_until_ready((y_train, y_eval))

    # Pure-JAX reference check (materialize the outer product only here).
    weight_epsilon = jnp.outer(params["eps_out"], params["eps_in"])
    w_eff = params["weight_mu"] + params["weight_sigma"] * weight_epsilon
    b_eff = params["bias_mu"] + params["bias_sigma"] * params["bias_epsilon"]
    ref_train = x @ w_eff.T + b_eff
    ref_eval = x @ params["weight_mu"].T + params["bias_mu"]

    assert jnp.allclose(y_train, ref_train, atol=1e-5, rtol=1e-5)
    assert jnp.allclose(y_eval, ref_eval, atol=1e-5, rtol=1e-5)

    print("KERNEL_OK")
</pallas_src>

<mosaic_0001>
module attributes {stable_mosaic.version = 11 : i64} {
  func.func @_noisy_linear_train_kernel(%arg0: i32, %arg1: i32, %arg2: i32, %arg3: memref<8x128xf32, #tpu.memory_space<vmem>>, %arg4: memref<128x128xf32, #tpu.memory_space<vmem>>, %arg5: memref<128x128xf32, #tpu.memory_space<vmem>>, %arg6: memref<128x1xf32, #tpu.memory_space<vmem>>, %arg7: memref<1x128xf32, #tpu.memory_space<vmem>>, %arg8: memref<1x128xf32, #tpu.memory_space<vmem>>, %arg9: memref<8x128xf32, #tpu.memory_space<vmem>>, %arg10: memref<8x128xf32, #tpu.memory_space<vmem>>) attributes {dimension_semantics = [#tpu.dimension_semantics<parallel>, #tpu.dimension_semantics<parallel>, #tpu.dimension_semantics<arbitrary>], iteration_bounds = array<i64: 1, 1, 1>, scalar_prefetch = 0 : i64, scratch_operands = 1 : i64, tpu.core_type = #tpu.core_type<tc>, window_params = [{transform_indices = @transform_0, window_bounds = array<i64: 8, 128>}, {transform_indices = @transform_1, window_bounds = array<i64: 128, 128>}, {transform_indices = @transform_2, window_bounds = array<i64: 128, 128>}, {transform_indices = @transform_3, window_bounds = array<i64: 128, 1>}, {transform_indices = @transform_4, window_bounds = array<i64: 1, 128>}, {transform_indices = @transform_5, window_bounds = array<i64: 1, 128>}, {transform_indices = @transform_6, window_bounds = array<i64: 8, 128>}]} {
    %c0_i32 = arith.constant 0 : i32
    %0 = arith.cmpi eq, %arg2, %c0_i32 : i32
    %1 = arith.extui %0 : i1 to i32
    %c0_i32_0 = arith.constant 0 : i32
    %2 = arith.cmpi ne, %1, %c0_i32_0 : i32
    scf.if %2 {
      %cst_16 = arith.constant 0.000000e+00 : f32
      %20 = vector.broadcast %cst_16 : f32 to vector<8x128xf32>
      %c0_17 = arith.constant 0 : index
      %c0_18 = arith.constant 0 : index
      %21 = vector.load %arg10[%c0_17, %c0_18] : memref<8x128xf32, #tpu.memory_space<vmem>>, vector<8x128xf32>
      tpu.vector_store %arg10[%c0_17, %c0_18], %20 {strides = array<i32>} : memref<8x128xf32, #tpu.memory_space<vmem>>, vector<8x128xf32>,
    } else {
    }
    %c0 = arith.constant 0 : index
    %c0_1 = arith.constant 0 : index
    %3 = vector.load %arg4[%c0, %c0_1] : memref<128x128xf32, #tpu.memory_space<vmem>>, vector<128x128xf32>
    %c0_2 = arith.constant 0 : index
    %c0_3 = arith.constant 0 : index
    %4 = vector.load %arg5[%c0_2, %c0_3] : memref<128x128xf32, #tpu.memory_space<vmem>>, vector<128x128xf32>
    %c0_4 = arith.constant 0 : index
    %c0_5 = arith.constant 0 : index
    %5 = vector.load %arg6[%c0_4, %c0_5] : memref<128x1xf32, #tpu.memory_space<vmem>>, vector<128x1xf32>
    %c0_6 = arith.constant 0 : index
    %c0_7 = arith.constant 0 : index
    %6 = vector.load %arg7[%c0_6, %c0_7] : memref<1x128xf32, #tpu.memory_space<vmem>>, vector<1x128xf32>
    %7 = vector.broadcast %5 : vector<128x1xf32> to vector<128x128xf32>
    %8 = vector.broadcast %6 : vector<1x128xf32> to vector<128x128xf32>
    %9 = arith.mulf %7, %8 : vector<128x128xf32>
    %10 = arith.mulf %4, %9 : vector<128x128xf32>
    %11 = arith.addf %3, %10 : vector<128x128xf32>
    %c0_8 = arith.constant 0 : index
    %c0_9 = arith.constant 0 : index
    %12 = vector.load %arg10[%c0_8, %c0_9] : memref<8x128xf32, #tpu.memory_space<vmem>>, vector<8x128xf32>
    %c0_10 = arith.constant 0 : index
    %c0_11 = arith.constant 0 : index
    %13 = vector.load %arg3[%c0_10, %c0_11] : memref<8x128xf32, #tpu.memory_space<vmem>>, vector<8x128xf32>
    %cst = arith.constant dense<0.000000e+00> : vector<8x128xf32>
    %14 = tpu.matmul %13, %11, %cst {dimension_numbers = #tpu.dot_dimension_numbers<[1], [0], [0], [1], [0, 0, 1, 1], [], []>} : vector<8x128xf32>, vector<128x128xf32>, vector<8x128xf32> -> vector<8x128xf32>
    %15 = arith.addf %12, %14 : vector<8x128xf32>
    %c0_12 = arith.constant 0 : index
    %c0_13 = arith.constant 0 : index
    %16 = vector.load %arg10[%c0_12, %c0_13] : memref<8x128xf32, #tpu.memory_space<vmem>>, vector<8x128xf32>
    tpu.vector_store %arg10[%c0_12, %c0_13], %15 {strides = array<i32>} : memref<8x128xf32, #tpu.memory_space<vmem>>, vector<8x128xf32>,
    %c0_i32_14 = arith.constant 0 : i32
    %17 = arith.cmpi eq, %arg2, %c0_i32_14 : i32
    %18 = arith.extui %17 : i1 to i32
    %c0_i32_15 = arith.constant 0 : i32
    %19 = arith.cmpi ne, %18, %c0_i32_15 : i32
    scf.if %19 {
      %c0_16 = arith.constant 0 : index
      %c0_17 = arith.constant 0 : index
      %20 = vector.load %arg10[%c0_16, %c0_17] : memref<8x128xf32, #tpu.memory_space<vmem>>, vector<8x128xf32>
      %c0_18 = arith.constant 0 : index
      %c0_19 = arith.constant 0 : index
      %21 = vector.load %arg8[%c0_18, %c0_19] : memref<1x128xf32, #tpu.memory_space<vmem>>, vector<1x128xf32>
      %22 = vector.broadcast %21 : vector<1x128xf32> to vector<8x128xf32>
      %23 = arith.addf %20, %22 : vector<8x128xf32>
      %c0_20 = arith.constant 0 : index
      %c0_21 = arith.constant 0 : index
      %24 = vector.load %arg9[%c0_20, %c0_21] : memref<8x128xf32, #tpu.memory_space<vmem>>, vector<8x128xf32>
      tpu.vector_store %arg9[%c0_20, %c0_21], %23 {strides = array<i32>} : memref<8x128xf32, #tpu.memory_space<vmem>>, vector<8x128xf32>,
    } else {
    }
    return
  }
  func.func @transform_0(%arg0: i32, %arg1: i32, %arg2: i32) -> (i32, i32) {
    %c0_i32 = arith.constant 0 : i32
    return %arg0, %arg2 : i32, i32
  }
  func.func @transform_1(%arg0: i32, %arg1: i32, %arg2: i32) -> (i32, i32) {
    %c0_i32 = arith.constant 0 : i32
    return %arg2, %arg1 : i32, i32
  }
  func.func @transform_2(%arg0: i32, %arg1: i32, %arg2: i32) -> (i32, i32) {
    %c0_i32 = arith.constant 0 : i32
    return %arg2, %arg1 : i32, i32
  }
  func.func @transform_3(%arg0: i32, %arg1: i32, %arg2: i32) -> (i32, i32) {
    %c0_i32 = arith.constant 0 : i32
    %c0_i32_0 = arith.constant 0 : i32
    return %arg2, %c0_i32 : i32, i32
  }
  func.func @transform_4(%arg0: i32, %arg1: i32, %arg2: i32) -> (i32, i32) {
    %c0_i32 = arith.constant 0 : i32
    %c0_i32_0 = arith.constant 0 : i32
    return %c0_i32, %arg1 : i32, i32
  }
  func.func @transform_5(%arg0: i32, %arg1: i32, %arg2: i32) -> (i32, i32) {
    %c0_i32 = arith.constant 0 : i32
    %c0_i32_0 = arith.constant 0 : i32
    return %c0_i32, %arg1 : i32, i32
  }
  func.func @transform_6(%arg0: i32, %arg1: i32, %arg2: i32) -> (i32, i32) {
    %c0_i32 = arith.constant 0 : i32
    return %arg0, %arg1 : i32, i32
  }
}

</mosaic_0001>

<bundles_post_ra>
// kernel: noisy_layer_forward.1
= control target key start
LH: loop header
LB: loop body
LE: loop exit
PB: predicated region body
PF: predicated region fallthrough
CT: control target
= control target key end

     0   :  { %v422_v2 = vmov 0   ;;  %s653_s0 = inlined_call_operand.vmem [shape: f32[8,128], index: 0, kind: input, shape index: {}]   ;;  %s654_s1 = inlined_call_operand.vmem [shape: f32[128,128], index: 1, kind: input, shape index: {}]   ;;  %s655_s2 = inlined_call_operand.vmem [shape: f32[128,128], index: 2, kind: input, shape index: {}]   ;;  %s656_s3 = inlined_call_operand.vmem [shape: f32[128,1], index: 3, kind: input, shape index: {}]   ;;  %s657_s4 = inlined_call_operand.vmem [shape: f32[1,128], index: 4, kind: input, shape index: {}]   ;;  %s658_s5 = inlined_call_operand.vmem [shape: f32[1,128], index: 5, kind: input, shape index: {}]   ;;  %s659_s6 = inlined_call_operand.hbm [shape: f32[8,128], index: 6, kind: output, shape index: {}]  }
   0x1   :  { %v63_v0 = vld [vmem:[%s656_s3 + $0x10] sm:$0xff]  ;;  %v61_v1 = vld [vmem:[%s656_s3] sm:$0xff]  ;;  %397 = vset.pattern.permute.xlu1 %v422_v2  ;;  %396 = vset.pattern.permute.xlu0 %v422_v2  ;;  %v64_v3 = vld [vmem:[%s656_s3 + $0x18] sm:$0xff] }
   0x2   :  { %90 = vperm.xlu1 %397, %v63_v0   ;;  %80 = vperm.xlu0 %396, %v61_v1   ;;  %v62_v4 = vld [vmem:[%s656_s3 + $0x8] sm:$0xff]  ;;  %v65_v6 = vld [vmem:[%s656_s3 + $0x20] sm:$0xff] }
   0x3   :  { %v66_v5 = vld [vmem:[%s656_s3 + $0x28] sm:$0xff] }
   0x6   :  { %95 = vperm.xlu1 %397, %v64_v3   ;;  %85 = vperm.xlu0 %396, %v62_v4  }
   0x7   :  { %11 = vsyncpa [#allocation4], 0  ;;  %v68_v7 = vld [vmem:[%s656_s3 + $0x38] sm:$0xff]  ;;  %v67_v8 = vld [vmem:[%s656_s3 + $0x30] sm:$0xff]  ;;  %v423_v9 = vmov 0.0|0.0   ;;  %vm424_vm0 = vmmov 0  }
   0x8   :  { %367 = vmatprep.subr.bf16.mxu0 %v423_v9  ;;  %v70_v10 = vld [vmem:[%s656_s3 + $0x48] sm:$0xff]  ;;  %v69_v11 = vld [vmem:[%s656_s3 + $0x40] sm:$0xff]  ;;  %v72_v12 = vld [vmem:[%s656_s3 + $0x58] sm:$0xff]  ;;  %v425_v18 = vmov 0.0  }
   0x9   :  { %v71_v13 = vld [vmem:[%s656_s3 + $0x50] sm:$0xff]  ;;  %v74_v14 = vld [vmem:[%s656_s3 + $0x68] sm:$0xff]  ;;  %v73_v15 = vld [vmem:[%s656_s3 + $0x60] sm:$0xff]  ;;  %364 = vmatprep.mubr.msk.f32.mxu0 %vm424_vm0, %v425_v18 }
   0xa   :  { %105 = vperm.xlu1 %397, %v66_v5   ;;  %100 = vperm.xlu0 %396, %v65_v6   ;;  %v76_v16 = vld [vmem:[%s656_s3 + $0x78] sm:$0xff]  ;;  %v75_v17 = vld [vmem:[%s656_s3 + $0x70] sm:$0xff]  ;;  %v514_v19 = vld [vmem:[%s657_s4] ss:$0 sm:$0xff] }
   0xb   :  { %v45_v24 = vld [vmem:[%s655_s2] sm:$0xff]  ;;  %v47_v25 = vld [vmem:[%s655_s2 + $0x10] sm:$0xff]  ;;  %v48_v27 = vld [vmem:[%s655_s2 + $0x18] sm:$0xff] }
   0xc   :  { %v46_v29 = vld [vmem:[%s655_s2 + $0x8] sm:$0xff]  ;;  %v29_v34 = vld [vmem:[%s654_s1] sm:$0xff]  ;;  %v31_v36 = vld [vmem:[%s654_s1 + $0x10] sm:$0xff] }
   0xd   :  { %v30_v35 = vld [vmem:[%s654_s1 + $0x8] sm:$0xff]  ;;  %v32_v37 = vld [vmem:[%s654_s1 + $0x18] sm:$0xff]  ;;  %v49_v43 = vld [vmem:[%s655_s2 + $0x20] sm:$0xff] }
   0xe   :  { %115 = vperm.xlu1 %397, %v68_v7   ;;  %110 = vperm.xlu0 %396, %v67_v8   ;;  %v50_v41 = vld [vmem:[%s655_s2 + $0x28] sm:$0xff]  ;;  %v33_v54 = vld [vmem:[%s654_s1 + $0x20] sm:$0xff]  ;;  %v52_v56 = vld [vmem:[%s655_s2 + $0x38] sm:$0xff] }
   0xf   :  { %v34_v50 = vld [vmem:[%s654_s1 + $0x28] sm:$0xff]  ;;  %v51_v58 = vld [vmem:[%s655_s2 + $0x30] sm:$0xff]  ;;  %v36_v0 = vld [vmem:[%s654_s1 + $0x38] sm:$0xff] }
  0x10   :  { %v35_v2 = vld [vmem:[%s654_s1 + $0x30] sm:$0xff]  ;;  %v54_v5 = vld [vmem:[%s655_s2 + $0x48] sm:$0xff]  ;;  %v53_v7 = vld [vmem:[%s655_s2 + $0x40] sm:$0xff] }
  0x12   :  { %125 = vperm.xlu1 %397, %v70_v10   ;;  %120 = vperm.xlu0 %396, %v69_v11  }
  0x16   :  { %135 = vperm.xlu1 %397, %v72_v12   ;;  %130 = vperm.xlu0 %396, %v71_v13   ;;  %v38_v13 = vld [vmem:[%s654_s1 + $0x48] sm:$0xff] }
  0x1a   :  { %145 = vperm.xlu1 %397, %v74_v14   ;;  %140 = vperm.xlu0 %396, %v73_v15  }
  0x1e   :  { %155 = vperm.xlu1 %397, %v76_v16   ;;  %150 = vperm.xlu0 %396, %v75_v17   ;;  %v37_v17 = vld [vmem:[%s654_s1 + $0x40] sm:$0xff] }
  0x81   :  { %v91_v20 = vpop.permute.xlu1 %90  ;;  %v81_v21 = vpop.permute.xlu0 %80 }
  0x82   :  { %v164_v22 = vmul.f32 %v514_v19, %v81_v21  ;;  %v166_v23 = vmul.f32 %v514_v19, %v91_v20  ;;  %v56_v20 = vld [vmem:[%s655_s2 + $0x58] sm:$0xff] }
  0x84   :  { %v180_v30 = vmul.f32 %v164_v22, %v45_v24  ;;  %v182_v33 = vmul.f32 %v166_v23, %v47_v25  ;;  %v55_v22 = vld [vmem:[%s655_s2 + $0x50] sm:$0xff] }
  0x85   :  { %v96_v26 = vpop.permute.xlu1 %95  ;;  %v86_v28 = vpop.permute.xlu0 %85 }
  0x86   :  { %v167_v31 = vmul.f32 %v514_v19, %v96_v26  ;;  %v165_v32 = vmul.f32 %v514_v19, %v86_v28  ;;  %v196_v46 = vadd.f32 %v180_v30, %v29_v34  ;;  %v198_v48 = vadd.f32 %v182_v33, %v31_v36  ;;  %v40_v28 = vld [vmem:[%s654_s1 + $0x58] sm:$0xff]  ;;  %v39_v30 = vld [vmem:[%s654_s1 + $0x50] sm:$0xff]  ;;  %v58_v33 = vld [vmem:[%s655_s2 + $0x68] sm:$0xff] }
  0x88   :  { %v183_v38 = vmul.f32 %v167_v31, %v48_v27  ;;  %v181_v39 = vmul.f32 %v165_v32, %v46_v29 }
  0x89   :  { %v106_v40 = vpop.permute.xlu1 %105  ;;  %v101_v42 = vpop.permute.xlu0 %100 }
  0x8a   :  { %v169_v44 = vmul.f32 %v514_v19, %v106_v40  ;;  %v168_v45 = vmul.f32 %v514_v19, %v101_v42  ;;  %v197_v47 = vadd.f32 %v181_v39, %v30_v35  ;;  %v199_v49 = vadd.f32 %v183_v38, %v32_v37  ;;  %v57_v35 = vld [vmem:[%s655_s2 + $0x60] sm:$0xff]  ;;  %v42_v40 = vld [vmem:[%s654_s1 + $0x68] sm:$0xff] }
  0x8c   :  { %v185_v51 = vmul.f32 %v169_v44, %v50_v41  ;;  %v184_v52 = vmul.f32 %v168_v45, %v49_v43  ;;  %v368_v53 = vpack.c.bf16 %v197_v47, %v196_v46  ;;  %v371_v61 = vpack.c.bf16 %v199_v49, %v198_v48  ;;  %v41_v44 = vld [vmem:[%s654_s1 + $0x60] sm:$0xff]  ;;  %v60_v46 = vld [vmem:[%s655_s2 + $0x78] sm:$0xff]  ;;  %v59_v48 = vld [vmem:[%s655_s2 + $0x70] sm:$0xff] }
  0x8d   :  { %v116_v55 = vpop.permute.xlu1 %115  ;;  %v111_v57 = vpop.permute.xlu0 %110 }
  0x8e   :  { %v171_v59 = vmul.f32 %v514_v19, %v116_v55  ;;  %v170_v60 = vmul.f32 %v514_v19, %v111_v57  ;;  %369 = vmatpush3.bf16.msra.mxu0 %v368_v53  ;;  %v201_v62 = vadd.f32 %v185_v51, %v34_v50  ;;  %v200_v63 = vadd.f32 %v184_v52, %v33_v54  ;;  %v43_v57 = vld [vmem:[%s654_s1 + $0x70] sm:$0xff] }
  0x8f   :  { %370 = vmatprep.subr.bf16.mxu0 %v423_v9 }
  0x90   :  { %v187_v1 = vmul.f32 %v171_v59, %v52_v56  ;;  %v186_v3 = vmul.f32 %v170_v60, %v51_v58  ;;  %v374_v16 = vpack.c.bf16 %v201_v62, %v200_v63  ;;  %v44_v56 = vld [vmem:[%s654_s1 + $0x78] sm:$0xff]  ;;  %v314_v62 = vld [vmem:[%s658_s5] ss:$0 sm:$0xff]  ;;  %s426_s1 = smov [#allocation3]  }
  0x91   :  { %v126_v4 = vpop.permute.xlu1 %125  ;;  %v121_v6 = vpop.permute.xlu0 %120  ;;  %s305_s20 = sshll.u32 %s426_s1, 4  ;;  %s306_s20 = int_to_ptr.vmem [resolvable:$true] %s305_s20 }
  0x92   :  { %v173_v8 = vmul.f32 %v514_v19, %v126_v4  ;;  %v172_v10 = vmul.f32 %v514_v19, %v121_v6  ;;  %372 = vmatpush3.bf16.msra.mxu0 %v371_v61  ;;  %v203_v11 = vadd.f32 %v187_v1, %v36_v0  ;;  %v202_v12 = vadd.f32 %v186_v3, %v35_v2  ;;  %v213_v61 = vld [vmem:[%s653_s0] sm:$0xff]  ;;  %s398_s21 = scalar_lea.vmem %s306_s20, 128  ;;  %p403_p1 = scmp.lt.s32.totalorder %s306_s20, %s306_s20 }
  0x93   :  { %373 = vmatprep.subr.bf16.mxu0 %v423_v9  ;;  %p399_p0 = scmp.ne.s32.totalorder %s306_s20, %s398_s21  ;;  %p404_p2 = scmp.lt.s32.totalorder %s398_s21, %s398_s21 }
  0x94   :  { %v189_v14 = vmul.f32 %v173_v8, %v54_v5  ;;  %v188_v15 = vmul.f32 %v172_v10, %v53_v7  ;;  %v377_v25 = vpack.c.bf16 %v203_v11, %v202_v12 }
  0x95   :  { %v136_v18 = vpop.permute.xlu1 %135  ;;  %v131_v21 = vpop.permute.xlu0 %130  ;;  %p405_p3 = por %p404_p2, %p403_p1 }
  0x96   :  { %v175_v23 = vmul.f32 %v514_v19, %v136_v18  ;;  %v174_v24 = vmul.f32 %v514_v19, %v131_v21  ;;  %375 = vmatpush3.bf16.msra.mxu0 %v374_v16  ;;  %v205_v26 = vadd.f32 %v189_v14, %v38_v13  ;;  %v204_v27 = vadd.f32 %v188_v15, %v37_v17 }
  0x97   :  { %376 = vmatprep.subr.bf16.mxu0 %v423_v9  ;;  %p406_p4 = pnand %p405_p3, %p399_p0 }
  0x98   :  { %v191_v29 = vmul.f32 %v175_v23, %v56_v20  ;;  %v190_v31 = vmul.f32 %v174_v24, %v55_v22  ;;  %v380_v43 = vpack.c.bf16 %v205_v26, %v204_v27 }
  0x99   :  { %v146_v32 = vpop.permute.xlu1 %145  ;;  %v141_v34 = vpop.permute.xlu0 %140 }
  0x9a   :  { %v177_v36 = vmul.f32 %v514_v19, %v146_v32  ;;  %v176_v37 = vmul.f32 %v514_v19, %v141_v34  ;;  %378 = vmatpush3.bf16.msra.mxu0 %v377_v25  ;;  %v207_v38 = vadd.f32 %v191_v29, %v40_v28  ;;  %v206_v39 = vadd.f32 %v190_v31, %v39_v30 }
  0x9b   :  { %379 = vmatprep.subr.bf16.mxu0 %v423_v9 }
  0x9c   :  { %v193_v41 = vmul.f32 %v177_v36, %v58_v33  ;;  %v192_v42 = vmul.f32 %v176_v37, %v57_v35  ;;  %v383_v51 = vpack.c.bf16 %v207_v38, %v206_v39 }
  0x9d   :  { %v156_v45 = vpop.permute.xlu1 %155  ;;  %v151_v47 = vpop.permute.xlu0 %150 }
  0x9e   :  { %v179_v49 = vmul.f32 %v514_v19, %v156_v45  ;;  %v178_v50 = vmul.f32 %v514_v19, %v151_v47  ;;  %381 = vmatpush3.bf16.msra.mxu0 %v380_v43  ;;  %v209_v52 = vadd.f32 %v193_v41, %v42_v40  ;;  %v208_v53 = vadd.f32 %v192_v42, %v41_v44 }
  0x9f   :  { %382 = vmatprep.subr.bf16.mxu0 %v423_v9 }
  0xa0   :  { %v195_v54 = vmul.f32 %v179_v49, %v60_v46  ;;  %v194_v55 = vmul.f32 %v178_v50, %v59_v48  ;;  %v386_v59 = vpack.c.bf16 %v209_v52, %v208_v53 }
  0xa2   :  { %384 = vmatpush3.bf16.msra.mxu0 %v383_v51  ;;  %v211_v19 = vadd.f32 %v195_v54, %v44_v56  ;;  %v210_v58 = vadd.f32 %v194_v55, %v43_v57 }
  0xa3   :  { %385 = vmatprep.subr.bf16.mxu0 %v423_v9 }
  0xa4   :  { %v389_v60 = vpack.c.bf16 %v211_v19, %v210_v58 }
  0xa6   :  { %387 = vmatpush3.bf16.msra.mxu0 %v386_v59 }
  0xa7   :  { %388 = vmatprep.subr.bf16.mxu0 %v423_v9 }
  0xaa   :  { %390 = vmatpush3.bf16.msra.mxu0 %v389_v60 }
  0xad   :  { %365 = vmatmul.mubr.f32.vlgmr.msra.gmra.mrb[0].mxu0 %v213_v61 }
 0x180   :  { %v280_v63 = vpop.f32.mrb[0].mxu0 }
 0x181   :  { %v297_v0 = vadd.f32 %v314_v62, %v280_v63  ;;  %v366_v1 = vpop.f32.mrb[1].mxu0 }
 0x183   :  { %298 = vst [vmem:[#allocation3] sm:$0xff] %v297_v0 }
 0x184   :  { %409 = shalt.err (!%p406_p4)
}
 0x185   :  { %s410_s23 = scalar_lea.hbm %s659_s6, 128 }
 0x186   :  { %p411_p5 = scmp.ne.s32.totalorder %s659_s6, %s410_s23  ;;  %p414_p6 = scmp.lt.u32.totalorder %s410_s23, %s659_s6 }
 0x188   :  { %p416_p7 = pnand %p414_p6, %p411_p5 }
 0x18a   :  { %419 = shalt.err (!%p416_p7)
}
 0x18b   :  { %308 = dma.vmem_to_hbm [thread:$0]  %s306_s20, 128, %s659_s6, [#allocation4]  }
 0x18c   :  { %420 = dma.done.wait [#allocation4], 128  }
 0x18d   :  { %421 = vsyncadd [#allocation4], 4294967168 }
 0x18e   :  { %312 = vsyncpa [#allocation4], 1 }

</bundles_post_ra>
